<compile_context>
chip_gen: v7x
topology: tpu7x:2x2x1
jax: 0.10.0
libtpu: 0.0.40
codegen_flags: <defaults>
</compile_context>

<pallas_src>
import jax
import jax.numpy as jnp
import numpy as np
from jax import lax
from jax.experimental import pallas as pl
from jax.experimental.pallas import tpu as pltpu


def _round_up(n, m):
    return ((n + m - 1) // m) * m


# ---------------------------------------------------------------------------
# Pallas kernel: fused bidirectional LSTM recurrence + final Linear, in VMEM.
# ---------------------------------------------------------------------------
def blstm_head_kernel(x_ref, wih_ref, whh_ref, b_ref, wfc_ref, bfc_ref,
                      out_ref, gx_ref):
    # x_ref   : (Tr, TB, 4F)  time-major paired input [x_t | x_{Tr-1-t}]
    # wih_ref : (4F, 8H)      block-diagonal fused input->gate weights  [i|f|o|g]
    # whh_ref : (2H, 8H)      block-diagonal fused hidden->gate weights [i|f|o|g]
    # b_ref   : (1, 8H)       fused (b_ih + b_hh), both directions, f32
    # wfc_ref : (2H, C)       fc1 weight, transposed
    # bfc_ref : (1, C)        fc1 bias, f32
    # out_ref : (TB, C)       logits
    # gx_ref  : (Tr, TB, 8H)  scratch: precomputed input-side gate terms
    Tr, TB, F4 = x_ref.shape
    H8 = whh_ref.shape[1]
    H2 = H8 // 4

    wih = wih_ref[...]
    whh = whh_ref[...]
    # Hoisted single broadcast (JAX doesn't CSE broadcast_in_dim inside loops).
    bias_b = jnp.broadcast_to(b_ref[...], (TB, H8))

    # ---- Hoisted input projection: ONE (Tr*TB, 4F) x (4F, 8H) matmul. -----
    xf = x_ref[...].reshape(Tr * TB, F4)
    gx = jnp.dot(xf, wih, preferred_element_type=jnp.float32)
    gx_ref[...] = gx.reshape(Tr, TB, H8).astype(gx_ref.dtype)

    # ---- Serial recurrence: one fused matmul + sliced activations/step. ---
    # TODO(synk): hold whh in the MXU weight registers across the loop via
    # pltpu.matmul_push_rhs / matmul_acc_lhs / matmul_pop to avoid re-staging
    # the (2H,8H) RHS every step; kept on jnp.dot for portable lowering.
    def step(t, carry):
        h, c = carry                                       # (TB, 2H) f32 each
        gates = (
            gx_ref[t].astype(jnp.float32) + bias_b
            + jnp.dot(h.astype(whh.dtype), whh,
                      preferred_element_type=jnp.float32)
        )                                                  # (TB, 8H) f32
        ifo = jax.nn.sigmoid(gates[:, :3 * H2])   # [i_f|i_b | f_f|f_b | o_f|o_b]
        g = jnp.tanh(gates[:, 3 * H2:])           # [g_f|g_b]
        i = ifo[:, :H2]
        f = ifo[:, H2:2 * H2]
        o = ifo[:, 2 * H2:]
        c_new = f * c + i * g
        h_new = o * jnp.tanh(c_new)
        return h_new, c_new

    zeros = jnp.zeros((TB, H2), jnp.float32)
    unroll = True if Tr <= 8 else 4   # guard full unroll for long sequences
    h, _ = lax.fori_loop(0, Tr, step, (zeros, zeros), unroll=unroll)

    # ---- fc1 on [h_f | h_b] (fused lane layout == torch concat order). ----
    logits = (
        jnp.dot(h.astype(wfc_ref.dtype), wfc_ref[...],
                preferred_element_type=jnp.float32)
        + bfc_ref[...]
    )
    out_ref[...] = logits.astype(out_ref.dtype)


# ---------------------------------------------------------------------------
# Wrapper-side weight fusion (pure layout plumbing, done once outside kernel)
# ---------------------------------------------------------------------------
_GATE_PERM = (0, 1, 3, 2)  # torch gate order (i,f,g,o) -> fused order (i,f,o,g)


def _fuse_blockdiag_ifog(w_f_t, w_b_t, H):
    """w_f_t, w_b_t: (rows, 4H) transposed per-direction weights with torch
    gate order (i,f,g,o) along columns. Returns the block-diagonal
    (rows_f + rows_b, 8H) matrix with gate-major / direction-minor columns in
    the order [i_f|i_b | f_f|f_b | o_f|o_b | g_f|g_b] (sigmoid block first)."""
    rf = w_f_t.shape[0]
    rb = w_b_t.shape[0]
    wf = w_f_t.reshape(rf, 4, H)[:, _GATE_PERM, :].reshape(rf, 4, 1, H)
    wb = w_b_t.reshape(rb, 4, H)[:, _GATE_PERM, :].reshape(rb, 4, 1, H)
    top = jnp.concatenate([wf, jnp.zeros_like(wf)], axis=2).reshape(rf, 8 * H)
    bot = jnp.concatenate([jnp.zeros_like(wb), wb], axis=2).reshape(rb, 8 * H)
    return jnp.concatenate([top, bot], axis=0)


def _fuse_bias_ifog(b_f, b_b, H):
    bf = b_f.reshape(4, H)[jnp.array(_GATE_PERM)]
    bb = b_b.reshape(4, H)[jnp.array(_GATE_PERM)]
    return jnp.stack([bf, bb], axis=1).reshape(1, 8 * H)


# ---------------------------------------------------------------------------
# Parameter construction (deterministic, PyTorch-style uniform(-1/sqrt(H), .))
# ---------------------------------------------------------------------------
def init_params(key, input_feature_dim, hidden_dim, num_classes):
    F2 = input_feature_dim * 2
    H = hidden_dim
    k_lstm = 1.0 / np.sqrt(H)
    k_fc = 1.0 / np.sqrt(2 * H)

    keys = jax.random.split(key, 10)
    u = lambda k, shape, lim: jax.random.uniform(
        k, shape, jnp.float32, minval=-lim, maxval=lim
    )
    return {
        "wih_f": u(keys[0], (4 * H, F2), k_lstm),
        "whh_f": u(keys[1], (4 * H, H), k_lstm),
        "bih_f": u(keys[2], (4 * H,), k_lstm),
        "bhh_f": u(keys[3], (4 * H,), k_lstm),
        "wih_b": u(keys[4], (4 * H, F2), k_lstm),
        "whh_b": u(keys[5], (4 * H, H), k_lstm),
        "bih_b": u(keys[6], (4 * H,), k_lstm),
        "bhh_b": u(keys[7], (4 * H,), k_lstm),
        "wfc": u(keys[8], (num_classes, 2 * H), k_fc),
        "bfc": u(keys[9], (num_classes,), k_fc),
    }


# ---------------------------------------------------------------------------
# Forward wrapper: reshape / weight-fusion glue in JAX, hot path in the kernel
# ---------------------------------------------------------------------------
def rnn_classification_forward(x, params, compute_dtype=jnp.bfloat16,
                               batch_tile=None):
    B, T, F = x.shape
    Tr = T // 2
    F2 = 2 * F
    F4 = 2 * F2
    H = params["whh_f"].shape[1]
    C = params["wfc"].shape[0]
    H2, H8 = 2 * H, 8 * H

    # ---- Batch tiling: MXU-friendly M dim; pad batch with zero rows. ------
    min_rows = 16 if compute_dtype == jnp.bfloat16 else 8
    if batch_tile is None:
        batch_tile = min(128, _round_up(B, min_rows))
    TB = max(min_rows, _round_up(batch_tile, min_rows))
    B_pad = _round_up(B, TB)

    x = x.astype(jnp.float32)
    if B_pad != B:
        x = jnp.pad(x, ((0, B_pad - B), (0, 0), (0, 0)))   # zero rows -> finite

    # torch: input_x.contiguous().view(B, T/2, 2F); then time-major and pair
    # each timestep with its time-reversed counterpart so one block-diagonal
    # matmul serves both LSTM directions.
    x_r = jnp.transpose(x.reshape(B_pad, Tr, F2), (1, 0, 2))   # (Tr, Bp, 2F)
    x_pair = jnp.concatenate([x_r, x_r[::-1]], axis=-1)        # (Tr, Bp, 4F)

    wih_bd = _fuse_blockdiag_ifog(params["wih_f"].T, params["wih_b"].T, H)
    whh_bd = _fuse_blockdiag_ifog(params["whh_f"].T, params["whh_b"].T, H)
    bias = _fuse_bias_ifog(params["bih_f"] + params["bhh_f"],
                           params["bih_b"] + params["bhh_b"], H)
    wfc_t = params["wfc"].T                                    # (2H, C)
    bfc = params["bfc"].reshape(1, C).astype(jnp.float32)

    # MXU operands in compute_dtype (bf16 on v6e/v7x); gate math, bias and
    # cell state stay f32 (v5e has no bf16 VPU/EUP).
    x_pair = x_pair.astype(compute_dtype)
    wih_bd = wih_bd.astype(compute_dtype)
    whh_bd = whh_bd.astype(compute_dtype)
    wfc_t = wfc_t.astype(compute_dtype)
    bias = bias.astype(jnp.float32)

    # gx scratch in compute dtype (bf16 halves the dominant resident buffer on
    # v7x's 64 MiB VMEM); the f32 bias is added at step time, never rounded.
    gx_dtype = compute_dtype
    itemsize = jnp.dtype(compute_dtype).itemsize
    gx_itemsize = jnp.dtype(gx_dtype).itemsize

    grid = (B_pad // TB,)

    # ---- Explicit VMEM budget (v5e 16 MiB scoped default, v7x 64 MiB). ----
    gx_bytes = Tr * TB * H8 * gx_itemsize
    x_blk_bytes = Tr * TB * F4 * itemsize
    w_bytes = ((wih_bd.size + whh_bd.size + wfc_t.size) * itemsize
               + (bias.size + bfc.size) * 4)
    needed = gx_bytes + 2 * (x_blk_bytes + w_bytes + TB * C * 4)
    vmem_limit = int(min(max(2 * needed, 16 << 20), 64 << 20))

    # ---- Cost estimate (sliced activations, incl. gx scratch traffic). ----
    flops = 2 * Tr * B_pad * (F4 * H8 + H2 * H8) + 2 * B_pad * H2 * C
    transcendentals = Tr * B_pad * 5 * H2          # 6H sigmoid + 2H tanh + 2H tanh(c)
    bytes_accessed = (
        (x_pair.size + wih_bd.size + whh_bd.size + wfc_t.size) * itemsize
        + (bias.size + bfc.size + B_pad * C) * 4
        + 2 * Tr * B_pad * H8 * gx_itemsize
    )

    out = pl.pallas_call(
        blstm_head_kernel,
        out_shape=jax.ShapeDtypeStruct((B_pad, C), jnp.float32),
        grid_spec=pltpu.PrefetchScalarGridSpec(
            num_scalar_prefetch=0,
            grid=grid,
            in_specs=[
                pl.BlockSpec((Tr, TB, F4), lambda i: (0, i, 0)),   # x (batch-tiled)
                pl.BlockSpec((F4, H8), lambda i: (0, 0)),          # W_ih (replicated)
                pl.BlockSpec((H2, H8), lambda i: (0, 0)),          # W_hh
                pl.BlockSpec((1, H8), lambda i: (0, 0)),           # bias
                pl.BlockSpec((H2, C), lambda i: (0, 0)),           # fc weight
                pl.BlockSpec((1, C), lambda i: (0, 0)),            # fc bias
            ],
            out_specs=pl.BlockSpec((TB, C), lambda i: (i, 0)),
            scratch_shapes=[pltpu.VMEM((Tr, TB, H8), gx_dtype)],
        ),
        compiler_params=pltpu.CompilerParams(
            dimension_semantics=("parallel",),
            vmem_limit_bytes=vmem_limit),
        cost_estimate=pl.CostEstimate(
            flops=flops, transcendentals=transcendentals,
            bytes_accessed=bytes_accessed),
    )(x_pair, wih_bd, whh_bd, bias, wfc_t, bfc)
    return out[:B]


# ---------------------------------------------------------------------------
# Pure-JAX reference (mirrors torch.nn.LSTM bidirectional, 1 layer, batch_first)
# ---------------------------------------------------------------------------
def ref_forward(x, p):
    B, T, F = x.shape
    Tr = T // 2
    H = p["whh_f"].shape[1]
    xr = x.reshape(B, Tr, 2 * F).astype(jnp.float32)

    def cell(x_t, h, c, wih, whh, bih, bhh):
        gates = x_t @ wih.T + h @ whh.T + bih + bhh
        i, f, g, o = jnp.split(gates, 4, axis=-1)
        i = jax.nn.sigmoid(i)
        f = jax.nn.sigmoid(f)
        g = jnp.tanh(g)
        o = jax.nn.sigmoid(o)
        c = f * c + i * g
        h = o * jnp.tanh(c)
        return h, c

    h_f = c_f = h_b = c_b = jnp.zeros((B, H), jnp.float32)
    for t in range(Tr):
        h_f, c_f = cell(xr[:, t], h_f, c_f, p["wih_f"], p["whh_f"],
                        p["bih_f"], p["bhh_f"])
        h_b, c_b = cell(xr[:, Tr - 1 - t], h_b, c_b, p["wih_b"], p["whh_b"],
                        p["bih_b"], p["bhh_b"])
    return jnp.concatenate([h_f, h_b], axis=-1) @ p["wfc"].T + p["bfc"]


if __name__ == "__main__":
    # Shapes consistent with the module:
    #   input_feature_dim=4, hidden_dim=32, num_classes=5
    #   x: (batch=2, timestep=8, feature_dim=4)  -> LSTM input (2, 4, 8)
    input_feature_dim = 4
    hidden_dim = 32
    num_classes = 5
    B, T = 2, 8

    key = jax.random.PRNGKey(0)
    k_x, k_p = jax.random.split(key)
    x = jax.random.normal(k_x, (B, T, input_feature_dim), jnp.float32)
    params = init_params(k_p, input_feature_dim, hidden_dim, num_classes)

    ref = np.asarray(ref_forward(x, params))

    # f32 MXU operands: tight check against the PyTorch-equivalent reference.
    out_f32 = jax.block_until_ready(
        rnn_classification_forward(x, params, compute_dtype=jnp.float32))
    np.testing.assert_allclose(np.asarray(out_f32), ref, rtol=1e-3, atol=1e-3)

    # bf16 MXU operands / bf16 gx (v6e/v7x fast path); f32 gate math keeps it close.
    out_bf16 = jax.block_until_ready(
        rnn_classification_forward(x, params, compute_dtype=jnp.bfloat16))
    np.testing.assert_allclose(np.asarray(out_bf16), ref, rtol=5e-2, atol=5e-2)

    print("KERNEL_OK")
</pallas_src>

<mosaic_0001>
module attributes {stable_mosaic.version = 11 : i64} {
  func.func @blstm_head_kernel(%arg0: i32, %arg1: memref<4x8x16xf32, #tpu.memory_space<vmem>>, %arg2: memref<16x256xf32, #tpu.memory_space<vmem>>, %arg3: memref<64x256xf32, #tpu.memory_space<vmem>>, %arg4: memref<1x256xf32, #tpu.memory_space<vmem>>, %arg5: memref<64x5xf32, #tpu.memory_space<vmem>>, %arg6: memref<1x5xf32, #tpu.memory_space<vmem>>, %arg7: memref<8x5xf32, #tpu.memory_space<vmem>>, %arg8: memref<4x8x256xf32, #tpu.memory_space<vmem>>) attributes {dimension_semantics = [#tpu.dimension_semantics<parallel>], iteration_bounds = array<i64: 1>, scalar_prefetch = 0 : i64, scratch_operands = 1 : i64, tpu.core_type = #tpu.core_type<tc>, window_params = [{transform_indices = @transform_0, window_bounds = array<i64: 4, 8, 16>}, {pipeline_mode = #tpu.pipeline_mode<synchronous>, transform_indices = @transform_1, window_bounds = array<i64: 16, 256>}, {pipeline_mode = #tpu.pipeline_mode<synchronous>, transform_indices = @transform_2, window_bounds = array<i64: 64, 256>}, {pipeline_mode = #tpu.pipeline_mode<synchronous>, transform_indices = @transform_3, window_bounds = array<i64: 1, 256>}, {pipeline_mode = #tpu.pipeline_mode<synchronous>, transform_indices = @transform_4, window_bounds = array<i64: 64, 5>}, {pipeline_mode = #tpu.pipeline_mode<synchronous>, transform_indices = @transform_5, window_bounds = array<i64: 1, 5>}, {transform_indices = @transform_6, window_bounds = array<i64: 8, 5>}]} {
    %c0 = arith.constant 0 : index
    %c0_0 = arith.constant 0 : index
    %0 = vector.load %arg2[%c0, %c0_0] : memref<16x256xf32, #tpu.memory_space<vmem>>, vector<16x256xf32>
    %c0_1 = arith.constant 0 : index
    %c0_2 = arith.constant 0 : index
    %1 = vector.load %arg3[%c0_1, %c0_2] : memref<64x256xf32, #tpu.memory_space<vmem>>, vector<64x256xf32>
    %c0_3 = arith.constant 0 : index
    %c0_4 = arith.constant 0 : index
    %2 = vector.load %arg4[%c0_3, %c0_4] : memref<1x256xf32, #tpu.memory_space<vmem>>, vector<1x256xf32>
    %3 = vector.shape_cast %2 : vector<1x256xf32> to vector<1x256xf32>
    %4 = vector.broadcast %3 : vector<1x256xf32> to vector<8x256xf32>
    %c0_5 = arith.constant 0 : index
    %c0_6 = arith.constant 0 : index
    %c0_7 = arith.constant 0 : index
    %5 = vector.load %arg1[%c0_5, %c0_6, %c0_7] : memref<4x8x16xf32, #tpu.memory_space<vmem>>, vector<4x8x16xf32>
    %6 = vector.shape_cast %5 : vector<4x8x16xf32> to vector<32x16xf32>
    %cst = arith.constant dense<0.000000e+00> : vector<32x256xf32>
    %7 = tpu.matmul %6, %0, %cst {dimension_numbers = #tpu.dot_dimension_numbers<[1], [0], [0], [1], [0, 0, 1, 1], [], []>} : vector<32x16xf32>, vector<16x256xf32>, vector<32x256xf32> -> vector<32x256xf32>
    %8 = vector.shape_cast %7 : vector<32x256xf32> to vector<4x8x256xf32>
    %c0_8 = arith.constant 0 : index
    %c0_9 = arith.constant 0 : index
    %c0_10 = arith.constant 0 : index
    %9 = vector.load %arg8[%c0_8, %c0_9, %c0_10] : memref<4x8x256xf32, #tpu.memory_space<vmem>>, vector<4x8x256xf32>
    tpu.vector_store %arg8[%c0_8, %c0_9, %c0_10], %8 {strides = array<i32>} : memref<4x8x256xf32, #tpu.memory_space<vmem>>, vector<4x8x256xf32>,
    %cst_11 = arith.constant 0.000000e+00 : f32
    %10 = vector.broadcast %cst_11 : f32 to vector<8x64xf32>
    %c0_i32 = arith.constant 0 : i32
    %11 = arith.index_cast %c0_i32 : i32 to index
    %c0_12 = arith.constant 0 : index
    %c0_13 = arith.constant 0 : index
    %12 = vector.load %arg8[%11, %c0_12, %c0_13] : memref<4x8x256xf32, #tpu.memory_space<vmem>>, vector<1x8x256xf32>
    %13 = vector.shape_cast %12 : vector<1x8x256xf32> to vector<8x256xf32>
    %14 = arith.addf %13, %4 : vector<8x256xf32>
    %cst_14 = arith.constant dense<0.000000e+00> : vector<8x256xf32>
    %15 = tpu.matmul %10, %1, %cst_14 {dimension_numbers = #tpu.dot_dimension_numbers<[1], [0], [0], [1], [0, 0, 1, 1], [], []>} : vector<8x64xf32>, vector<64x256xf32>, vector<8x256xf32> -> vector<8x256xf32>
    %16 = arith.addf %14, %15 : vector<8x256xf32>
    %17 = vector.extract_strided_slice %16 {offsets = [0, 0], sizes = [8, 192], strides = [1, 1]} : vector<8x256xf32> to vector<8x192xf32>
    %18 = arith.negf %17 : vector<8x192xf32>
    %19 = math.exp %18 : vector<8x192xf32>
    %cst_15 = arith.constant 1.000000e+00 : f32
    %20 = vector.broadcast %cst_15 : f32 to vector<8x192xf32>
    %21 = arith.addf %20, %19 : vector<8x192xf32>
    %22 = arith.divf %20, %21 : vector<8x192xf32>
    %23 = vector.extract_strided_slice %16 {offsets = [0, 192], sizes = [8, 64], strides = [1, 1]} : vector<8x256xf32> to vector<8x64xf32>
    %24 = math.tanh %23 : vector<8x64xf32>
    %25 = vector.extract_strided_slice %22 {offsets = [0, 0], sizes = [8, 64], strides = [1, 1]} : vector<8x192xf32> to vector<8x64xf32>
    %26 = vector.extract_strided_slice %22 {offsets = [0, 64], sizes = [8, 64], strides = [1, 1]} : vector<8x192xf32> to vector<8x64xf32>
    %27 = vector.extract_strided_slice %22 {offsets = [0, 128], sizes = [8, 64], strides = [1, 1]} : vector<8x192xf32> to vector<8x64xf32>
    %28 = arith.mulf %26, %10 : vector<8x64xf32>
    %29 = arith.mulf %25, %24 : vector<8x64xf32>
    %30 = arith.addf %28, %29 : vector<8x64xf32>
    %31 = math.tanh %30 : vector<8x64xf32>
    %32 = arith.mulf %27, %31 : vector<8x64xf32>
    %c1_i32 = arith.constant 1 : i32
    %33 = arith.index_cast %c1_i32 : i32 to index
    %c0_16 = arith.constant 0 : index
    %c0_17 = arith.constant 0 : index
    %34 = vector.load %arg8[%33, %c0_16, %c0_17] : memref<4x8x256xf32, #tpu.memory_space<vmem>>, vector<1x8x256xf32>
    %35 = vector.shape_cast %34 : vector<1x8x256xf32> to vector<8x256xf32>
    %36 = arith.addf %35, %4 : vector<8x256xf32>
    %cst_18 = arith.constant dense<0.000000e+00> : vector<8x256xf32>
    %37 = tpu.matmul %32, %1, %cst_18 {dimension_numbers = #tpu.dot_dimension_numbers<[1], [0], [0], [1], [0, 0, 1, 1], [], []>} : vector<8x64xf32>, vector<64x256xf32>, vector<8x256xf32> -> vector<8x256xf32>
    %38 = arith.addf %36, %37 : vector<8x256xf32>
    %39 = vector.extract_strided_slice %38 {offsets = [0, 0], sizes = [8, 192], strides = [1, 1]} : vector<8x256xf32> to vector<8x192xf32>
    %40 = arith.negf %39 : vector<8x192xf32>
    %41 = math.exp %40 : vector<8x192xf32>
    %cst_19 = arith.constant 1.000000e+00 : f32
    %42 = vector.broadcast %cst_19 : f32 to vector<8x192xf32>
    %43 = arith.addf %42, %41 : vector<8x192xf32>
    %44 = arith.divf %42, %43 : vector<8x192xf32>
    %45 = vector.extract_strided_slice %38 {offsets = [0, 192], sizes = [8, 64], strides = [1, 1]} : vector<8x256xf32> to vector<8x64xf32>
    %46 = math.tanh %45 : vector<8x64xf32>
    %47 = vector.extract_strided_slice %44 {offsets = [0, 0], sizes = [8, 64], strides = [1, 1]} : vector<8x192xf32> to vector<8x64xf32>
    %48 = vector.extract_strided_slice %44 {offsets = [0, 64], sizes = [8, 64], strides = [1, 1]} : vector<8x192xf32> to vector<8x64xf32>
    %49 = vector.extract_strided_slice %44 {offsets = [0, 128], sizes = [8, 64], strides = [1, 1]} : vector<8x192xf32> to vector<8x64xf32>
    %50 = arith.mulf %48, %30 : vector<8x64xf32>
    %51 = arith.mulf %47, %46 : vector<8x64xf32>
    %52 = arith.addf %50, %51 : vector<8x64xf32>
    %53 = math.tanh %52 : vector<8x64xf32>
    %54 = arith.mulf %49, %53 : vector<8x64xf32>
    %c2_i32 = arith.constant 2 : i32
    %55 = arith.index_cast %c2_i32 : i32 to index
    %c0_20 = arith.constant 0 : index
    %c0_21 = arith.constant 0 : index
    %56 = vector.load %arg8[%55, %c0_20, %c0_21] : memref<4x8x256xf32, #tpu.memory_space<vmem>>, vector<1x8x256xf32>
    %57 = vector.shape_cast %56 : vector<1x8x256xf32> to vector<8x256xf32>
    %58 = arith.addf %57, %4 : vector<8x256xf32>
    %cst_22 = arith.constant dense<0.000000e+00> : vector<8x256xf32>
    %59 = tpu.matmul %54, %1, %cst_22 {dimension_numbers = #tpu.dot_dimension_numbers<[1], [0], [0], [1], [0, 0, 1, 1], [], []>} : vector<8x64xf32>, vector<64x256xf32>, vector<8x256xf32> -> vector<8x256xf32>
    %60 = arith.addf %58, %59 : vector<8x256xf32>
    %61 = vector.extract_strided_slice %60 {offsets = [0, 0], sizes = [8, 192], strides = [1, 1]} : vector<8x256xf32> to vector<8x192xf32>
    %62 = arith.negf %61 : vector<8x192xf32>
    %63 = math.exp %62 : vector<8x192xf32>
    %cst_23 = arith.constant 1.000000e+00 : f32
    %64 = vector.broadcast %cst_23 : f32 to vector<8x192xf32>
    %65 = arith.addf %64, %63 : vector<8x192xf32>
    %66 = arith.divf %64, %65 : vector<8x192xf32>
    %67 = vector.extract_strided_slice %60 {offsets = [0, 192], sizes = [8, 64], strides = [1, 1]} : vector<8x256xf32> to vector<8x64xf32>
    %68 = math.tanh %67 : vector<8x64xf32>
    %69 = vector.extract_strided_slice %66 {offsets = [0, 0], sizes = [8, 64], strides = [1, 1]} : vector<8x192xf32> to vector<8x64xf32>
    %70 = vector.extract_strided_slice %66 {offsets = [0, 64], sizes = [8, 64], strides = [1, 1]} : vector<8x192xf32> to vector<8x64xf32>
    %71 = vector.extract_strided_slice %66 {offsets = [0, 128], sizes = [8, 64], strides = [1, 1]} : vector<8x192xf32> to vector<8x64xf32>
    %72 = arith.mulf %70, %52 : vector<8x64xf32>
    %73 = arith.mulf %69, %68 : vector<8x64xf32>
    %74 = arith.addf %72, %73 : vector<8x64xf32>
    %75 = math.tanh %74 : vector<8x64xf32>
    %76 = arith.mulf %71, %75 : vector<8x64xf32>
    %c3_i32 = arith.constant 3 : i32
    %77 = arith.index_cast %c3_i32 : i32 to index
    %c0_24 = arith.constant 0 : index
    %c0_25 = arith.constant 0 : index
    %78 = vector.load %arg8[%77, %c0_24, %c0_25] : memref<4x8x256xf32, #tpu.memory_space<vmem>>, vector<1x8x256xf32>
    %79 = vector.shape_cast %78 : vector<1x8x256xf32> to vector<8x256xf32>
    %80 = arith.addf %79, %4 : vector<8x256xf32>
    %cst_26 = arith.constant dense<0.000000e+00> : vector<8x256xf32>
    %81 = tpu.matmul %76, %1, %cst_26 {dimension_numbers = #tpu.dot_dimension_numbers<[1], [0], [0], [1], [0, 0, 1, 1], [], []>} : vector<8x64xf32>, vector<64x256xf32>, vector<8x256xf32> -> vector<8x256xf32>
    %82 = arith.addf %80, %81 : vector<8x256xf32>
    %83 = vector.extract_strided_slice %82 {offsets = [0, 0], sizes = [8, 192], strides = [1, 1]} : vector<8x256xf32> to vector<8x192xf32>
    %84 = arith.negf %83 : vector<8x192xf32>
    %85 = math.exp %84 : vector<8x192xf32>
    %cst_27 = arith.constant 1.000000e+00 : f32
    %86 = vector.broadcast %cst_27 : f32 to vector<8x192xf32>
    %87 = arith.addf %86, %85 : vector<8x192xf32>
    %88 = arith.divf %86, %87 : vector<8x192xf32>
    %89 = vector.extract_strided_slice %82 {offsets = [0, 192], sizes = [8, 64], strides = [1, 1]} : vector<8x256xf32> to vector<8x64xf32>
    %90 = math.tanh %89 : vector<8x64xf32>
    %91 = vector.extract_strided_slice %88 {offsets = [0, 0], sizes = [8, 64], strides = [1, 1]} : vector<8x192xf32> to vector<8x64xf32>
    %92 = vector.extract_strided_slice %88 {offsets = [0, 64], sizes = [8, 64], strides = [1, 1]} : vector<8x192xf32> to vector<8x64xf32>
    %93 = vector.extract_strided_slice %88 {offsets = [0, 128], sizes = [8, 64], strides = [1, 1]} : vector<8x192xf32> to vector<8x64xf32>
    %94 = arith.mulf %92, %74 : vector<8x64xf32>
    %95 = arith.mulf %91, %90 : vector<8x64xf32>
    %96 = arith.addf %94, %95 : vector<8x64xf32>
    %97 = math.tanh %96 : vector<8x64xf32>
    %98 = arith.mulf %93, %97 : vector<8x64xf32>
    %c4_i32 = arith.constant 4 : i32
    %c0_28 = arith.constant 0 : index
    %c0_29 = arith.constant 0 : index
    %99 = vector.load %arg5[%c0_28, %c0_29] : memref<64x5xf32, #tpu.memory_space<vmem>>, vector<64x5xf32>
    %cst_30 = arith.constant dense<0.000000e+00> : vector<8x5xf32>
    %100 = tpu.matmul %98, %99, %cst_30 {dimension_numbers = #tpu.dot_dimension_numbers<[1], [0], [0], [1], [0, 0, 1, 1], [], []>} : vector<8x64xf32>, vector<64x5xf32>, vector<8x5xf32> -> vector<8x5xf32>
    %c0_31 = arith.constant 0 : index
    %c0_32 = arith.constant 0 : index
    %101 = vector.load %arg6[%c0_31, %c0_32] : memref<1x5xf32, #tpu.memory_space<vmem>>, vector<1x5xf32>
    %102 = vector.broadcast %101 : vector<1x5xf32> to vector<8x5xf32>
    %103 = arith.addf %100, %102 : vector<8x5xf32>
    %c0_33 = arith.constant 0 : index
    %c0_34 = arith.constant 0 : index
    %104 = vector.load %arg7[%c0_33, %c0_34] : memref<8x5xf32, #tpu.memory_space<vmem>>, vector<8x5xf32>
    tpu.vector_store %arg7[%c0_33, %c0_34], %103 {strides = array<i32>} : memref<8x5xf32, #tpu.memory_space<vmem>>, vector<8x5xf32>,
    return
  }
  func.func @transform_0(%arg0: i32) -> (i32, i32, i32) {
    %c0_i32 = arith.constant 0 : i32
    %c0_i32_0 = arith.constant 0 : i32
    %c0_i32_1 = arith.constant 0 : i32
    return %c0_i32, %arg0, %c0_i32_0 : i32, i32, i32
  }
  func.func @transform_1(%arg0: i32) -> (i32, i32) {
    %c0_i32 = arith.constant 0 : i32
    %c0_i32_0 = arith.constant 0 : i32
    %c0_i32_1 = arith.constant 0 : i32
    return %c0_i32, %c0_i32_0 : i32, i32
  }
  func.func @transform_2(%arg0: i32) -> (i32, i32) {
    %c0_i32 = arith.constant 0 : i32
    %c0_i32_0 = arith.constant 0 : i32
    %c0_i32_1 = arith.constant 0 : i32
    return %c0_i32, %c0_i32_0 : i32, i32
  }
  func.func @transform_3(%arg0: i32) -> (i32, i32) {
    %c0_i32 = arith.constant 0 : i32
    %c0_i32_0 = arith.constant 0 : i32
    %c0_i32_1 = arith.constant 0 : i32
    return %c0_i32, %c0_i32_0 : i32, i32
  }
  func.func @transform_4(%arg0: i32) -> (i32, i32) {
    %c0_i32 = arith.constant 0 : i32
    %c0_i32_0 = arith.constant 0 : i32
    %c0_i32_1 = arith.constant 0 : i32
    return %c0_i32, %c0_i32_0 : i32, i32
  }
  func.func @transform_5(%arg0: i32) -> (i32, i32) {
    %c0_i32 = arith.constant 0 : i32
    %c0_i32_0 = arith.constant 0 : i32
    %c0_i32_1 = arith.constant 0 : i32
    return %c0_i32, %c0_i32_0 : i32, i32
  }
  func.func @transform_6(%arg0: i32) -> (i32, i32) {
    %c0_i32 = arith.constant 0 : i32
    %c0_i32_0 = arith.constant 0 : i32
    return %arg0, %c0_i32 : i32, i32
  }
}

</mosaic_0001>

<bundles_post_ra>
// kernel: tpu_custom_call.1
= control target key start
LH: loop header
LB: loop body
LE: loop exit
PB: predicated region body
PF: predicated region fallthrough
CT: control target
= control target key end

     0   :  { %11 = vsyncpa [#allocation4], 0  ;;  %s1189_s0 = inlined_call_operand.vmem [shape: f32[4,8,16], index: 0, kind: input, shape index: {}]   ;;  %s1190_s1 = inlined_call_operand.vmem [shape: f32[16,256], index: 1, kind: input, shape index: {}]   ;;  %s1191_s2 = inlined_call_operand.hbm [shape: f32[64,256], index: 2, kind: input, shape index: {}]   ;;  %s1192_s3 = inlined_call_operand.vmem [shape: f32[1,256], index: 3, kind: input, shape index: {}]   ;;  %s1193_s4 = inlined_call_operand.vmem [shape: f32[64,5], index: 4, kind: input, shape index: {}]   ;;  %s1194_s5 = inlined_call_operand.vmem [shape: f32[1,5], index: 5, kind: input, shape index: {}]   ;;  %s1195_s6 = inlined_call_operand.hbm [shape: f32[8,5], index: 6, kind: output, shape index: {}]  }
   0x1   :  { %12 = vsyncpa [#allocation5], 0  ;;  %s978_s21 = smov [#allocation3]   ;;  %s930_s25 = scalar_lea.hbm %s1191_s2, 2048 }
   0x2   :  { %s22_s22 = sshll.u32 %s978_s21, 4  ;;  %p931_p0 = scmp.ne.s32.totalorder %s1191_s2, %s930_s25  ;;  %s23_s22 = int_to_ptr.vmem [resolvable:$true] %s22_s22 }
   0x3   :  { %p934_p1 = scmp.lt.u32.totalorder %s930_s25, %s1191_s2 }
   0x5   :  { %p936_p2 = pnand %p934_p1, %p931_p0 }
   0x7   :  { %939 = shalt.err (!%p936_p2)
}
   0x8   :  { %s940_s30 = scalar_lea.vmem %s23_s22, 2048  ;;  %p945_p4 = scmp.lt.s32.totalorder %s23_s22, %s23_s22 }
   0x9   :  { %p941_p3 = scmp.ne.s32.totalorder %s23_s22, %s940_s30  ;;  %p946_p5 = scmp.lt.s32.totalorder %s940_s30, %s940_s30 }
   0xb   :  { %p947_p6 = por %p946_p5, %p945_p4 }
   0xd   :  { %p948_p7 = pnand %p947_p6, %p941_p3 }
   0xf   :  { %951 = shalt.err (!%p948_p7)
}
  0x10   :  { %s979_s7 = smov 256   ;;  %s980_s8 = smov 16  }
  0x11   :  { %28 = dma.hbm_to_vmem [thread:$0]  %s1191_s2, 2048, %s23_s22, [#allocation4], %s979_s7, %s979_s7, %s980_s8  }
  0x12   :  { %974 = dma.done.wait [#allocation4], 2048  }
  0x13   :  { %975 = vsyncadd [#allocation4], 4294965248  ;;  %v981_v0 = vmov 0.0   ;;  %v39_v1 = vld [vmem:[%s1190_s1 + $0x8] sm:$0xff]  ;;  %v41_v2 = vld [vmem:[%s1190_s1 + $0x18] sm:$0xff]  ;;  %vm74_vm0 = vcmask 130048   ;;  %v60_v35 = vlaneseq }
  0x14   :  { %151 = vmatprep.mubr.f32.mxu1 %v981_v0  ;;  %367 = vmatprep.mubr.f32.mxu0 %v981_v0  ;;  %v38_v3 = vld [vmem:[%s1190_s1] sm:$0xff]  ;;  %v778_v4 = vpack.c.bf16 %v41_v2, %v39_v1  ;;  %v40_v5 = vld [vmem:[%s1190_s1 + $0x10] sm:$0xff]  ;;  %v43_v6 = vld [vmem:[#allocation3 + $0x8] sm:$0xff]  ;;  %vm188_vm1 = vcmask 523264   ;;  %vm984_vm2 = vmmov 0   ;;  %s985_s18 = smov [#allocation6]  }
  0x15   :  { %v780_v7 = vpack.c.bf16 %v40_v5, %v38_v3  ;;  %v45_v8 = vld [vmem:[#allocation3 + $0x18] sm:$0xff]  ;;  %v42_v9 = vld [vmem:[#allocation3] sm:$0xff]  ;;  %v44_v10 = vld [vmem:[#allocation3 + $0x10] sm:$0xff]  ;;  %v61_v36 = vshrl.u32 %v60_v35, 7  ;;  %s724_s19 = sshll.u32 %s985_s18, 4  ;;  %vm716_vm3 = vcmask 39936   ;;  %s725_s19 = int_to_ptr.vmem [resolvable:$true] %s724_s19 }
  0x16   :  { %779 = vmatprep.subr.bf16.mxu1 %v778_v4  ;;  %v1047_v11 = vpack.c.bf16 %v45_v8, %v43_v6  ;;  %v47_v12 = vld [vmem:[#allocation3 + $0x28] sm:$0xff]  ;;  %v49_v13 = vld [vmem:[#allocation3 + $0x38] sm:$0xff]  ;;  %v70_v14 = vld [vmem:[%s1189_s0] sm:$0xff]  ;;  %v1052_v15 = vpack.c.bf16 %v44_v10, %v42_v9  ;;  %s952_s1 = scalar_lea.vmem %s725_s19, 128  ;;  %p957_p9 = scmp.lt.s32.totalorder %s725_s19, %s725_s19 }
  0x17   :  { %781 = vmatpush1.bf16.msra.mxu1 %v780_v7  ;;  %v1055_v16 = vpack.c.bf16 %v49_v13, %v47_v12  ;;  %v46_v17 = vld [vmem:[#allocation3 + $0x20] sm:$0xff]  ;;  %v48_v18 = vld [vmem:[#allocation3 + $0x30] sm:$0xff]  ;;  %v51_v19 = vld [vmem:[#allocation3 + $0x48] sm:$0xff]  ;;  %v62_v37 = vsub.s32 0, %v61_v36  ;;  %v66_v39 = vsub.s32 1, %v61_v36  ;;  %p953_p8 = scmp.ne.s32.totalorder %s725_s19, %s952_s1  ;;  %p958_p10 = scmp.lt.s32.totalorder %s952_s1, %s952_s1 }
  0x18   :  { %783 = vmatprep.subr.bf16.mxu1 %v1047_v11  ;;  %799 = vmatprep.subr.bf16.mxu0 %v1047_v11  ;;  %v53_v20 = vld [vmem:[#allocation3 + $0x58] sm:$0xff]  ;;  %v71_v21 = vld [vmem:[%s1189_s0 + $0x8] sm:$0xff]  ;;  %v1066_v22 = vpack.c.bf16 %v48_v18, %v46_v17  ;;  %v50_v24 = vld [vmem:[#allocation3 + $0x40] sm:$0xff] }
  0x19   :  { %801 = vmatpush1.bf16.msra.mxu0 %v1052_v15  ;;  %v1069_v23 = vpack.c.bf16 %v53_v20, %v51_v19  ;;  %v52_v25 = vld [vmem:[#allocation3 + $0x50] sm:$0xff]  ;;  %v55_v26 = vld [vmem:[#allocation3 + $0x68] sm:$0xff]  ;;  %v57_v27 = vld [vmem:[#allocation3 + $0x78] sm:$0xff]  ;;  %p959_p11 = por %p958_p10, %p957_p9 }
  0x1a   :  { %733 = vmatmul.mubr.msk.f32.vlgmr.msra.gmra.mrb[0].mxu1 %vm74_vm0, %v70_v14  ;;  %803 = vmatprep.subr.bf16.mxu0 %v1055_v16  ;;  %v72_v28 = vld [vmem:[%s1189_s0 + $0x10] sm:$0xff]  ;;  %v1079_v29 = vpack.c.bf16 %v52_v25, %v50_v24  ;;  %v1082_v30 = vpack.c.bf16 %v57_v27, %v55_v26  ;;  %v54_v31 = vld [vmem:[#allocation3 + $0x60] sm:$0xff]  ;;  %v73_v33 = vld [vmem:[%s1189_s0 + $0x18] sm:$0xff] }
  0x1b   :  { %785 = vmatpush1.bf16.msra.mxu1 %v1052_v15  ;;  %157 = vmatprep.mubr.f32.mxu1 %v981_v0  ;;  %v56_v32 = vld [vmem:[#allocation3 + $0x70] sm:$0xff]  ;;  %v58_v38 = vld [vmem:[%s1192_s3] sm:$0x3]  ;;  %s982_s3 = smov 64   ;;  %p960_p12 = pnand %p959_p11, %p953_p8 }
  0x1c   :  { %787 = vmatprep.subr.bf16.mxu1 %v1055_v16  ;;  %v1092_v34 = vpack.c.bf16 %v56_v32, %v54_v31  ;;  %v63_v40 = vrot.slane %v58_v38, %v62_v37  ;;  %v67_v41 = vrot.slane %v58_v38, %v66_v39 }
  0x1d   :  { %805 = vmatpush1.bf16.msra.mxu0 %v1066_v22 }
  0x1e   :  { %734 = vmatmul.mubr.msk.f32.gmra.mrb[2].mxu1 %vm74_vm0, %v71_v21  ;;  %807 = vmatprep.subr.bf16.mxu0 %v1069_v23 }
  0x1f   :  { %789 = vmatpush1.bf16.msra.mxu1 %v1066_v22  ;;  %163 = vmatprep.mubr.f32.mxu1 %v981_v0 }
  0x20   :  { %791 = vmatprep.subr.bf16.mxu1 %v1069_v23 }
  0x21   :  { %809 = vmatpush1.bf16.msra.mxu0 %v1079_v29 }
  0x22   :  { %735 = vmatmul.mubr.msk.f32.gmra.mrb[4].mxu1 %vm74_vm0, %v72_v28  ;;  %811 = vmatprep.subr.bf16.mxu0 %v1082_v30 }
  0x23   :  { %793 = vmatpush1.bf16.msra.mxu1 %v1079_v29  ;;  %169 = vmatprep.mubr.f32.mxu1 %v981_v0 }
  0x24   :  { %795 = vmatprep.subr.bf16.mxu1 %v1082_v30 }
  0x25   :  { %813 = vmatpush1.bf16.msra.mxu0 %v1092_v34 }
  0x26   :  { %736 = vmatmul.mubr.msk.f32.gmra.mrb[6].mxu1 %vm74_vm0, %v73_v33  ;;  %815 = vmatprep.subr.bf16.mxu0 %v1047_v11 }
  0x27   :  { %797 = vmatpush1.bf16.msra.mxu1 %v1092_v34  ;;  %256 = vmatprep.mubr.f32.mxu1 %v981_v0 }
  0x2a   :  { %257 = vmatmul.mubr.f32.vlgmr.msra.gmra.mrb[0].mxu1 %v981_v0 }
  0x2b   :  { %775 = vmatprep.mubr.msk.f32.mxu1 %vm984_vm2, %v981_v0 }
  0xf1   :  { %v159_v42 = vpop.f32.mrb[2].mxu1 }
  0xf2   :  { %v298_v43 = vadd.f32 %v159_v42, %v63_v40  ;;  %v161_v44 = vpop.f32.mrb[3].mxu1 }
  0xf3   :  { %v299_v45 = vadd.f32 %v161_v44, %v67_v41 }
  0xf5   :  { %v165_v46 = vpop.f32.mrb[4].mxu1 }
  0xf6   :  { %v1104_v47 = vadd.f32 %v165_v46, %v63_v40  ;;  %v167_v48 = vpop.f32.mrb[5].mxu1 }
  0xf7   :  { %v1106_v49 = vadd.f32 %v167_v48, %v67_v41 }
  0xf9   :  { %v171_v50 = vpop.f32.mrb[6].mxu1 }
  0xfa   :  { %v1108_v51 = vadd.f32 %v171_v50, %v63_v40  ;;  %v173_v52 = vpop.f32.mrb[7].mxu1 }
  0xfb   :  { %v1110_v53 = vadd.f32 %v173_v52, %v67_v41 }
  0xfd   :  { %v258_v54 = vpop.f32.mrb[0].mxu1 }
  0xfe   :  { %v260_v55 = vpop.f32.mrb[1].mxu1  ;;  %v858_v58 = vadd.f32 %v258_v54, %v63_v40 }
  0xff   :  { %v859_v56 = vadd.f32 %v260_v55, %v67_v41 }
 0x100   :  { %v737_v59 = vmul.f32 -1.442695, %v858_v58 }
 0x101   :  { %882 = vtanh.f32 %v859_v56  ;;  %v738_v6 = vmul.f32 -1.442695, %v859_v56 }
 0x102   :  { %884 = vpow2.f32 %v737_v59 }
 0x10b   :  { %v883_v57 = vpop.eup %882 }
 0x10c   :  { %280 = vrot.lane.b32.xlu0 %v883_v57, %s982_s3  ;;  %v885_v60 = vpop.eup %884 }
 0x10d   :  { %v271_v61 = vadd.f32 1.0, %v885_v60 }
 0x10f   :  { %886 = vrcp.f32 %v271_v61 }
 0x119   :  { %v887_v62 = vpop.eup %886 }
 0x11a   :  { %v278_v2 = vmul.f32 0.0, %v887_v62 }
 0x17e   :  { %v281_v63 = vpop.permute.xlu0 %280 }
 0x17f   :  { %v283_v1 = vmul.f32 %v887_v62, %v281_v63 }
 0x181   :  { %285 = vrot.lane.b32.xlu0 %v283_v1, %s982_s3 }
 0x1f3   :  { %v286_v3 = vpop.permute.xlu0 %285 }
 0x1f4   :  { %v288_v4 = vadd.f32 %v286_v3, %v278_v2 }
 0x1f6   :  { %888 = vtanh.f32 %v288_v4 }
 0x1f7   :  { %890 = vpow2.f32 %v738_v6 }
 0x200   :  { %v889_v5 = vpop.eup %888 }
 0x201   :  { %291 = vrot.lane.b32.xlu1 %v889_v5, %s982_s3  ;;  %v891_v7 = vpop.eup %890  ;;  %v983_v5 = vmov 0.0|0.0  }
 0x202   :  { %v272_v8 = vadd.f32 1.0, %v891_v7  ;;  %846 = vmatprep.subr.bf16.mxu1 %v983_v5  ;;  %v631_v7 = vld [vmem:[%s1193_s4 + $0x18] sm:$0xff] }
 0x204   :  { %892 = vrcp.f32 %v272_v8 }
 0x20e   :  { %v893_v9 = vpop.eup %892 }
 0x273   :  { %v292_v10 = vpop.permute.xlu1 %291 }
 0x274   :  { %v294_v12 = vmul.f32 %v893_v9, %v292_v10  ;;  %v632_v9 = vld [vmem:[%s1193_s4 + $0x20] sm:$0xff]  ;;  %v633_v10 = vld [vmem:[%s1193_s4 + $0x28] sm:$0xff] }
 0x276   :  { %739 = vmatmul.mubr.msk.f32.vlgmr.msra.gmra.mrb[0].mxu0 %vm188_vm1, %v294_v12  ;;  %v853_v12 = vpack.c.bf16 %v633_v10, %v632_v9 }
 0x277   :  { %817 = vmatpush1.bf16.msra.mxu0 %v1052_v15  ;;  %478 = vmatprep.mubr.f32.mxu0 %v981_v0 }
 0x278   :  { %819 = vmatprep.subr.bf16.mxu0 %v1055_v16 }
 0x27b   :  { %821 = vmatpush1.bf16.msra.mxu0 %v1066_v22 }
 0x27c   :  { %823 = vmatprep.subr.bf16.mxu0 %v1069_v23 }
 0x27f   :  { %825 = vmatpush1.bf16.msra.mxu0 %v1079_v29 }
 0x280   :  { %827 = vmatprep.subr.bf16.mxu0 %v1082_v30 }
 0x283   :  { %829 = vmatpush1.bf16.msra.mxu0 %v1092_v34 }
 0x284   :  { %831 = vmatprep.subr.bf16.mxu0 %v1047_v11 }
 0x349   :  { %v369_v13 = vpop.f32.mrb[0].mxu0 }
 0x34a   :  { %v374_v14 = vadd.f32 %v369_v13, %v298_v43  ;;  %v371_v17 = vpop.f32.mrb[1].mxu0  ;;  %v634_v13 = vld [vmem:[%s1193_s4 + $0x30] sm:$0xff] }
 0x34b   :  { %v375_v18 = vadd.f32 %v371_v17, %v299_v45 }
 0x34c   :  { %v740_v20 = vmul.f32 -1.442695, %v374_v14  ;;  %v635_v14 = vld [vmem:[%s1193_s4 + $0x38] sm:$0xff] }
 0x34d   :  { %894 = vtanh.f32 %v375_v18  ;;  %v741_v33 = vmul.f32 -1.442695, %v375_v18  ;;  %v856_v17 = vpack.c.bf16 %v635_v14, %v634_v13 }
 0x34e   :  { %896 = vpow2.f32 %v740_v20 }
 0x357   :  { %v895_v19 = vpop.eup %894 }
 0x358   :  { %391 = vrot.lane.b32.xlu1 %v895_v19, %s982_s3  ;;  %v897_v21 = vpop.eup %896 }
 0x359   :  { %v382_v24 = vadd.f32 1.0, %v897_v21 }
 0x35b   :  { %898 = vrcp.f32 %v382_v24 }
 0x365   :  { %v899_v25 = vpop.eup %898 }
 0x366   :  { %v389_v28 = vmul.f32 %v899_v25, %v288_v4  ;;  %v630_v4 = vld [vmem:[%s1193_s4 + $0x10] sm:$0xff] }
 0x367   :  { %v850_v8 = vpack.c.bf16 %v631_v7, %v630_v4 }
 0x3ca   :  { %v392_v26 = vpop.permute.xlu1 %391 }
 0x3cb   :  { %v394_v27 = vmul.f32 %v899_v25, %v392_v26 }
 0x3cd   :  { %396 = vrot.lane.b32.xlu0 %v394_v27, %s982_s3 }
 0x43f   :  { %v397_v11 = vpop.permute.xlu0 %396 }
 0x440   :  { %v399_v31 = vadd.f32 %v397_v11, %v389_v28 }
 0x442   :  { %900 = vtanh.f32 %v399_v31 }
 0x443   :  { %902 = vpow2.f32 %v741_v33 }
 0x44c   :  { %v901_v32 = vpop.eup %900 }
 0x44d   :  { %402 = vrot.lane.b32.xlu1 %v901_v32, %s982_s3  ;;  %v903_v35 = vpop.eup %902 }
 0x44e   :  { %v383_v36 = vadd.f32 1.0, %v903_v35 }
 0x450   :  { %904 = vrcp.f32 %v383_v36 }
 0x45a   :  { %v905_v37 = vpop.eup %904 }
 0x4bf   :  { %v403_v38 = vpop.permute.xlu1 %402 }
 0x4c0   :  { %v405_v39 = vmul.f32 %v905_v37, %v403_v38 }
 0x4c2   :  { %742 = vmatmul.mubr.msk.f32.vlgmr.msra.gmra.mrb[2].mxu0 %vm188_vm1, %v405_v39 }
 0x4c3   :  { %833 = vmatpush1.bf16.msra.mxu0 %v1052_v15  ;;  %589 = vmatprep.mubr.f32.mxu0 %v981_v0 }
 0x4c4   :  { %835 = vmatprep.subr.bf16.mxu0 %v1055_v16 }
 0x4c7   :  { %837 = vmatpush1.bf16.msra.mxu0 %v1066_v22 }
 0x4c8   :  { %839 = vmatprep.subr.bf16.mxu0 %v1069_v23 }
 0x4cb   :  { %841 = vmatpush1.bf16.msra.mxu0 %v1079_v29 }
 0x4cc   :  { %843 = vmatprep.subr.bf16.mxu0 %v1082_v30 }
 0x4cf   :  { %845 = vmatpush1.bf16.msra.mxu0 %v1092_v34 }
 0x595   :  { %v480_v40 = vpop.f32.mrb[2].mxu0 }
 0x596   :  { %v485_v41 = vadd.f32 %v480_v40, %v1104_v47  ;;  %v482_v42 = vpop.f32.mrb[3].mxu0 }
 0x597   :  { %v486_v15 = vadd.f32 %v482_v42, %v1106_v49 }
 0x598   :  { %v743_v16 = vmul.f32 -1.442695, %v485_v41 }
 0x599   :  { %906 = vtanh.f32 %v486_v15  ;;  %v744_v48 = vmul.f32 -1.442695, %v486_v15 }
 0x59a   :  { %908 = vpow2.f32 %v743_v16 }
 0x5a3   :  { %v907_v43 = vpop.eup %906 }
 0x5a4   :  { %502 = vrot.lane.b32.xlu0 %v907_v43, %s982_s3  ;;  %v909_v22 = vpop.eup %908 }
 0x5a5   :  { %v493_v23 = vadd.f32 1.0, %v909_v22 }
 0x5a7   :  { %910 = vrcp.f32 %v493_v23 }
 0x5b1   :  { %v911_v29 = vpop.eup %910 }
 0x5b2   :  { %v500_v34 = vmul.f32 %v911_v29, %v399_v31  ;;  %v748_v31 = vld [vmem:[%s1194_s5] ss:$0 sm:$0xff] }
 0x616   :  { %v503_v44 = vpop.permute.xlu0 %502 }
 0x617   :  { %v505_v30 = vmul.f32 %v911_v29, %v503_v44 }
 0x619   :  { %507 = vrot.lane.b32.xlu1 %v505_v30, %s982_s3 }
 0x68b   :  { %v508_v45 = vpop.permute.xlu1 %507 }
 0x68c   :  { %v510_v46 = vadd.f32 %v508_v45, %v500_v34 }
 0x68e   :  { %912 = vtanh.f32 %v510_v46 }
 0x68f   :  { %914 = vpow2.f32 %v744_v48 }
 0x698   :  { %v913_v47 = vpop.eup %912 }
 0x699   :  { %513 = vrot.lane.b32.xlu0 %v913_v47, %s982_s3  ;;  %v915_v49 = vpop.eup %914 }
 0x69a   :  { %v494_v50 = vadd.f32 1.0, %v915_v49 }
 0x69c   :  { %916 = vrcp.f32 %v494_v50 }
 0x6a6   :  { %v917_v52 = vpop.eup %916 }
 0x70b   :  { %v514_v54 = vpop.permute.xlu0 %513 }
 0x70c   :  { %v516_v55 = vmul.f32 %v917_v52, %v514_v54 }
 0x70e   :  { %745 = vmatmul.mubr.msk.f32.vlgmr.msra.gmra.mrb[4].mxu0 %vm188_vm1, %v516_v55 }
 0x7e1   :  { %v591_v56 = vpop.f32.mrb[4].mxu0 }
 0x7e2   :  { %v596_v57 = vadd.f32 %v591_v56, %v1108_v51  ;;  %v593_v58 = vpop.f32.mrb[5].mxu0  ;;  %v628_v51 = vld [vmem:[%s1193_s4] sm:$0xff] }
 0x7e3   :  { %v597_v59 = vadd.f32 %v593_v58, %v1110_v53  ;;  %v629_v53 = vld [vmem:[%s1193_s4 + $0x8] sm:$0xff] }
 0x7e4   :  { %v746_v61 = vmul.f32 -1.442695, %v596_v57  ;;  %v847_v6 = vpack.c.bf16 %v629_v53, %v628_v51 }
 0x7e5   :  { %918 = vtanh.f32 %v597_v59  ;;  %v747_v24 = vmul.f32 -1.442695, %v597_v59 }
 0x7e6   :  { %920 = vpow2.f32 %v746_v61  ;;  %848 = vmatpush3.bf16.msra.mxu1 %v847_v6 }
 0x7e7   :  { %849 = vmatprep.subr.bf16.mxu1 %v983_v5 }
 0x7ea   :  { %851 = vmatpush3.bf16.msra.mxu1 %v850_v8 }
 0x7eb   :  { %852 = vmatprep.subr.bf16.mxu1 %v983_v5 }
 0x7ee   :  { %854 = vmatpush3.bf16.msra.mxu1 %v853_v12 }
 0x7ef   :  { %v919_v60 = vpop.eup %918  ;;  %855 = vmatprep.subr.bf16.mxu1 %v983_v5 }
 0x7f0   :  { %613 = vrot.lane.b32.xlu1 %v919_v60, %s982_s3  ;;  %v921_v62 = vpop.eup %920 }
 0x7f1   :  { %v604_v63 = vadd.f32 1.0, %v921_v62 }
 0x7f2   :  { %857 = vmatpush3.bf16.msra.mxu1 %v856_v17 }
 0x7f3   :  { %922 = vrcp.f32 %v604_v63 }
 0x7fd   :  { %v923_v1 = vpop.eup %922 }
 0x7fe   :  { %v611_v18 = vmul.f32 %v923_v1, %v510_v46 }
 0x862   :  { %v614_v2 = vpop.permute.xlu1 %613 }
 0x863   :  { %v616_v3 = vmul.f32 %v923_v1, %v614_v2 }
 0x865   :  { %618 = vrot.lane.b32.xlu0 %v616_v3, %s982_s3 }
 0x8d7   :  { %v619_v19 = vpop.permute.xlu0 %618 }
 0x8d8   :  { %v621_v20 = vadd.f32 %v619_v19, %v611_v18 }
 0x8da   :  { %924 = vtanh.f32 %v621_v20 }
 0x8db   :  { %926 = vpow2.f32 %v747_v24 }
 0x8e4   :  { %v925_v21 = vpop.eup %924 }
 0x8e5   :  { %624 = vrot.lane.b32.xlu1 %v925_v21, %s982_s3  ;;  %v927_v25 = vpop.eup %926 }
 0x8e6   :  { %v605_v26 = vadd.f32 1.0, %v927_v25 }
 0x8e8   :  { %928 = vrcp.f32 %v605_v26 }
 0x8f2   :  { %v929_v27 = vpop.eup %928 }
 0x957   :  { %v625_v28 = vpop.permute.xlu1 %624 }
 0x958   :  { %v627_v11 = vmul.f32 %v929_v27, %v625_v28 }
 0x95a   :  { %776 = vmatmul.mubr.msk.f32.vlgmr.msra.gmra.mrb[8].mxu1 %vm188_vm1, %v627_v11 }
 0xa2d   :  { %v712_v0 = vpop.f32.mrb[8].mxu1 }
 0xa2e   :  { %v713_v32 = vadd.f32 %v748_v31, %v712_v0  ;;  %v777_v33 = vpop.f32.mrb[9].mxu1 }
 0xa30   :  { %717 = vst.msk [vmem:[#allocation6] sm:$0xff] %vm716_vm3, %v713_v32 }
 0xa31   :  { %963 = shalt.err (!%p960_p12)
}
 0xa32   :  { %s964_s22 = scalar_lea.hbm %s1195_s6, 128 }
 0xa33   :  { %p965_p13 = scmp.ne.s32.totalorder %s1195_s6, %s964_s22  ;;  %p968_p0 = scmp.lt.u32.totalorder %s964_s22, %s1195_s6 }
 0xa35   :  { %p970_p1 = pnand %p968_p0, %p965_p13 }
 0xa37   :  { %973 = shalt.err (!%p970_p1)
}
 0xa38   :  { %727 = dma.vmem_to_hbm [thread:$0]  %s725_s19, 128, %s1195_s6, [#allocation5]  }
 0xa39   :  { %976 = dma.done.wait [#allocation5], 128  }
 0xa3a   :  { %977 = vsyncadd [#allocation5], 4294967168 }
 0xa3b   :  { %731 = vsyncpa [#allocation4], 1 }
 0xa3c   :  { %732 = vsyncpa [#allocation5], 1 }

</bundles_post_ra>
